<compile_context>
chip_gen: v7x
topology: tpu7x:2x2x1
jax: 0.10.0
libtpu: 0.0.40
codegen_flags: <defaults>
</compile_context>

<pallas_src>
import jax
import jax.numpy as jnp
from jax.experimental import pallas as pl
from jax.experimental.pallas import tpu as pltpu

LANE = 128
SUBLANE = 8


def _sublane_multiple(dtype) -> int:
    """Minimum second-minor block multiple for this dtype (8 f32 / 16 bf16)."""
    itemsize = jnp.dtype(dtype).itemsize
    return SUBLANE * max(1, 4 // max(1, itemsize))


def _choose_block_rows(rows: int, mult: int, target: int) -> int:
    """Rows per grid step for one input."""
    if rows <= target:
        return rows                      # single block == full array dim (always legal)
    return max((target // mult) * mult, mult)


def _choose_acc_rows(block_rows: int) -> int:
    """Largest divisor of block_rows that is <= 64 (resident accumulator width)."""
    for cand in range(min(64, block_rows), 0, -1):
        if block_rows % cand == 0:
            return cand
    return 1


def _make_fused_kernel(specs, grid_steps):
    """Kernel computing sum((x_i + offset_i)^2) for every input i in one pass."""
    k = len(specs)

    def kernel(*refs):
        x_refs = refs[:k]
        sums_ref = refs[k]            # SMEM (k,) f32 scalar sums
        acc_refs = refs[k + 1:]       # one VMEM (acc_rows, LANE) f32 per input
        i = pl.program_id(0)

        @pl.when(i == 0)
        def _():
            for acc in acc_refs:
                acc[...] = jnp.zeros_like(acc)

        for idx in range(k):
            spec = specs[idx]
            x_ref = x_refs[idx]
            acc_ref = acc_refs[idx]
            rows = spec["rows"]
            block_rows = spec["block_rows"]
            steps = spec["steps"]
            acc_rows = spec["acc_rows"]
            offset = spec["offset"]
            groups = block_rows // acc_rows
            last = steps - 1
            valid_last = rows - last * block_rows      # valid rows in boundary block
            partial_last = valid_last < block_rows     # static

            def compute(masked, x_ref=x_ref, acc_ref=acc_ref, offset=offset,
                        groups=groups, acc_rows=acc_rows, valid_last=valid_last):
                x = x_ref[...].astype(jnp.float32) + offset
                sq = x * x
                if masked:
                    # Boundary block only: rows past the array edge hold garbage
                    # that was never DMA'd -- drop them with a select (NOT a
                    # multiplicative mask; garbage NaN/Inf would propagate).
                    ridx = jax.lax.broadcasted_iota(jnp.int32, sq.shape, 0)
                    sq = jnp.where(ridx < valid_last, sq, 0.0)
                if groups > 1:
                    # Tile-aligned fold into the wide resident accumulator:
                    # acc_rows//8 independent (8,128) add chains, pure VPU adds.
                    sq = sq.reshape(groups, acc_rows, LANE).sum(axis=0)
                acc_ref[...] += sq

            if steps == grid_steps and not partial_last:
                compute(False)                    # every step is a full block
            elif not partial_last:
                @pl.when(i < steps)
                def _(compute=compute):
                    compute(False)
            else:
                full_cond = (i != last) if steps == grid_steps else \
                    jnp.logical_and(i < steps, i != last)

                @pl.when(full_cond)
                def _(compute=compute):
                    compute(False)

                @pl.when(i == last)
                def _(compute=compute):
                    compute(True)

        # Finalize: per-input scalar sums so the wrapper only does scalar math.
        @pl.when(i == grid_steps - 1)
        def _():
            for idx in range(k):
                sums_ref[idx] = jnp.sum(acc_refs[idx][...])

    return kernel


def _fused_sq_sums(arrays2d, specs, grid_steps):
    """One pallas_call producing sum((x_i + offset_i)^2) for every (rows,128) slab."""
    k = len(arrays2d)

    def make_index_map(steps_x):
        if steps_x == grid_steps:
            return lambda i: (i, 0)
        last = steps_x - 1
        # Clamp: past this input's range the block index stops changing, so the
        # pipeline does not keep re-fetching and the kernel skips accumulation.
        return lambda i, last=last: (jnp.minimum(i, last), 0)

    in_specs = [pl.BlockSpec((s["block_rows"], LANE), make_index_map(s["steps"]))
                for s in specs]

    return pl.pallas_call(
        _make_fused_kernel(specs, grid_steps),
        out_shape=jax.ShapeDtypeStruct((k,), jnp.float32),
        grid_spec=pltpu.PrefetchScalarGridSpec(
            num_scalar_prefetch=0,
            grid=(grid_steps,),
            in_specs=in_specs,
            out_specs=pl.BlockSpec(memory_space=pltpu.MemorySpace.SMEM),
            scratch_shapes=[pltpu.VMEM((s["acc_rows"], LANE), jnp.float32)
                            for s in specs],
        ),
        compiler_params=pltpu.CompilerParams(
            dimension_semantics=("arbitrary",)),
    )(*arrays2d)


def ls_discriminator_loss(y_real: jax.Array, y_fake: jax.Array,
                          block_rows_target: int = 4096) -> jax.Array:
    """0.5*mean((y_real - 1)^2) + 0.5*mean((y_fake + 1)^2)."""
    terms = [(y_real, -1.0), (y_fake, 1.0)]

    kernel_arrays = []
    kernel_specs = []
    slot = [None, None]                               # kernel output slot per term
    extra = [jnp.float32(0.0), jnp.float32(0.0)]      # ragged lane-tail contributions

    for t, (y, off) in enumerate(terms):
        n = int(y.size)
        flat = y.reshape(-1)                          # free view (contiguous)
        n_bulk = (n // LANE) * LANE
        rows = n_bulk // LANE

        if n_bulk < n:
            # <=127-element ragged lane tail: tiny jnp op, no padded HBM copy.
            tail = flat[n_bulk:].astype(jnp.float32) + off
            extra[t] = jnp.sum(tail * tail)

        if rows == 0:
            continue                                  # empty or all-tail input

        if n_bulk == n:
            x2d = flat.reshape(rows, LANE)            # free lane-dense view
        else:
            # TODO(synk): XLA may materialize this prefix slice; a fully
            # zero-copy ragged bulk would need 1-D blocks or manual DMA.
            x2d = flat[:n_bulk].reshape(rows, LANE)

        mult = _sublane_multiple(x2d.dtype)
        block_rows = _choose_block_rows(rows, mult, block_rows_target)
        steps = int(pl.cdiv(rows, block_rows))
        slot[t] = len(kernel_arrays)
        kernel_arrays.append(x2d)
        kernel_specs.append(dict(rows=rows, block_rows=block_rows, steps=steps,
                                 acc_rows=_choose_acc_rows(block_rows),
                                 offset=off))

    sums = None
    if kernel_arrays:
        grid_steps = max(s["steps"] for s in kernel_specs)
        sums = _fused_sq_sums(kernel_arrays, kernel_specs, grid_steps)

    loss = jnp.float32(0.0)
    for t, (y, _) in enumerate(terms):
        n = int(y.size)
        s = extra[t]
        if slot[t] is not None:
            s = s + sums[slot[t]]
        # n == 0 -> 0/0 = NaN, matching torch.mean of an empty tensor.
        loss = loss + 0.5 * s / jnp.float32(n)
    return loss.astype(jnp.float32)


def _ref_loss(y_real, y_fake):
    r = y_real.astype(jnp.float32)
    f = y_fake.astype(jnp.float32)
    return 0.5 * jnp.mean((r - 1.0) ** 2) + 0.5 * jnp.mean((f + 1.0) ** 2)


if __name__ == "__main__":
    key = jax.random.PRNGKey(0)
    k1, k2, k3, k4 = jax.random.split(key, 4)

    # 1) Common case: lane-divisible f32 discriminator maps (NCHW), one fused
    #    launch, single full block per input, unmasked path.
    y_real = jax.random.normal(k1, (2, 4, 16, 16), dtype=jnp.float32)
    y_fake = jax.random.normal(k2, (2, 4, 16, 16), dtype=jnp.float32)
    loss = jax.block_until_ready(ls_discriminator_loss(y_real, y_fake))
    ref = _ref_loss(y_real, y_fake)
    assert jnp.allclose(loss, ref, rtol=1e-5, atol=1e-5), (loss, ref)

    # 2) Ragged / multi-step path: non-128-divisible sizes, unequal real vs
    #    fake, tiny block_rows_target forces several grid steps, exercises the
    #    boundary-step mask and the clamped index_map for the shorter input.
    y_real2 = jax.random.normal(k3, (2, 3, 33, 33), dtype=jnp.float32)
    y_fake2 = jax.random.normal(k4, (2, 4, 24, 24), dtype=jnp.float32)
    loss2 = jax.block_until_ready(
        ls_discriminator_loss(y_real2, y_fake2, block_rows_target=16))
    ref2 = _ref_loss(y_real2, y_fake2)
    assert jnp.allclose(loss2, ref2, rtol=1e-5, atol=1e-5), (loss2, ref2)

    # 3) Same ragged shapes with the default (large) tiles: single-block path.
    loss3 = jax.block_until_ready(ls_discriminator_loss(y_real2, y_fake2))
    assert jnp.allclose(loss3, ref2, rtol=1e-5, atol=1e-5), (loss3, ref2)

    # 4) bf16 inputs stay bf16 in HBM; cast to f32 only in-kernel.
    y_real4 = y_real.astype(jnp.bfloat16)
    y_fake4 = y_fake.astype(jnp.bfloat16)
    loss4 = jax.block_until_ready(ls_discriminator_loss(y_real4, y_fake4))
    ref4 = _ref_loss(y_real4, y_fake4)
    assert jnp.allclose(loss4, ref4, rtol=1e-4, atol=1e-4), (loss4, ref4)

    print("KERNEL_OK")
</pallas_src>

<mosaic_0001>
module attributes {stable_mosaic.version = 11 : i64} {
  func.func @kernel(%arg0: i32, %arg1: memref<16x128xf32, #tpu.memory_space<vmem>>, %arg2: memref<16x128xf32, #tpu.memory_space<vmem>>, %arg3: memref<2xf32, #tpu.memory_space<smem>>, %arg4: memref<16x128xf32, #tpu.memory_space<vmem>>, %arg5: memref<16x128xf32, #tpu.memory_space<vmem>>) attributes {dimension_semantics = [#tpu.dimension_semantics<arbitrary>], iteration_bounds = array<i64: 1>, scalar_prefetch = 0 : i64, scratch_operands = 2 : i64, tpu.core_type = #tpu.core_type<tc>, window_params = [{transform_indices = @transform_0, window_bounds = array<i64: 16, 128>}, {transform_indices = @transform_1, window_bounds = array<i64: 16, 128>}, {transform_indices = @transform_2, window_bounds = array<i64: 2>}]} {
    %c0_i32 = arith.constant 0 : i32
    %0 = arith.cmpi eq, %arg0, %c0_i32 : i32
    %1 = arith.extui %0 : i1 to i32
    %c0_i32_0 = arith.constant 0 : i32
    %2 = arith.cmpi ne, %1, %c0_i32_0 : i32
    scf.if %2 {
      %cst_15 = arith.constant 0.000000e+00 : f32
      %20 = vector.broadcast %cst_15 : f32 to vector<16x128xf32>
      %c0_16 = arith.constant 0 : index
      %c0_17 = arith.constant 0 : index
      %21 = vector.load %arg4[%c0_16, %c0_17] : memref<16x128xf32, #tpu.memory_space<vmem>>, vector<16x128xf32>
      tpu.vector_store %arg4[%c0_16, %c0_17], %20 {strides = array<i32>} : memref<16x128xf32, #tpu.memory_space<vmem>>, vector<16x128xf32>,
      %cst_18 = arith.constant 0.000000e+00 : f32
      %22 = vector.broadcast %cst_18 : f32 to vector<16x128xf32>
      %c0_19 = arith.constant 0 : index
      %c0_20 = arith.constant 0 : index
      %23 = vector.load %arg5[%c0_19, %c0_20] : memref<16x128xf32, #tpu.memory_space<vmem>>, vector<16x128xf32>
      tpu.vector_store %arg5[%c0_19, %c0_20], %22 {strides = array<i32>} : memref<16x128xf32, #tpu.memory_space<vmem>>, vector<16x128xf32>,
    } else {
    }
    %c0 = arith.constant 0 : index
    %c0_1 = arith.constant 0 : index
    %3 = vector.load %arg1[%c0, %c0_1] : memref<16x128xf32, #tpu.memory_space<vmem>>, vector<16x128xf32>
    %cst = arith.constant -1.000000e+00 : f32
    %4 = vector.broadcast %cst : f32 to vector<16x128xf32>
    %5 = arith.addf %3, %4 : vector<16x128xf32>
    %6 = arith.mulf %5, %5 : vector<16x128xf32>
    %c0_2 = arith.constant 0 : index
    %c0_3 = arith.constant 0 : index
    %7 = vector.load %arg4[%c0_2, %c0_3] : memref<16x128xf32, #tpu.memory_space<vmem>>, vector<16x128xf32>
    %8 = arith.addf %7, %6 : vector<16x128xf32>
    %c0_4 = arith.constant 0 : index
    %c0_5 = arith.constant 0 : index
    %9 = vector.load %arg4[%c0_4, %c0_5] : memref<16x128xf32, #tpu.memory_space<vmem>>, vector<16x128xf32>
    tpu.vector_store %arg4[%c0_4, %c0_5], %8 {strides = array<i32>} : memref<16x128xf32, #tpu.memory_space<vmem>>, vector<16x128xf32>,
    %c0_6 = arith.constant 0 : index
    %c0_7 = arith.constant 0 : index
    %10 = vector.load %arg2[%c0_6, %c0_7] : memref<16x128xf32, #tpu.memory_space<vmem>>, vector<16x128xf32>
    %cst_8 = arith.constant 1.000000e+00 : f32
    %11 = vector.broadcast %cst_8 : f32 to vector<16x128xf32>
    %12 = arith.addf %10, %11 : vector<16x128xf32>
    %13 = arith.mulf %12, %12 : vector<16x128xf32>
    %c0_9 = arith.constant 0 : index
    %c0_10 = arith.constant 0 : index
    %14 = vector.load %arg5[%c0_9, %c0_10] : memref<16x128xf32, #tpu.memory_space<vmem>>, vector<16x128xf32>
    %15 = arith.addf %14, %13 : vector<16x128xf32>
    %c0_11 = arith.constant 0 : index
    %c0_12 = arith.constant 0 : index
    %16 = vector.load %arg5[%c0_11, %c0_12] : memref<16x128xf32, #tpu.memory_space<vmem>>, vector<16x128xf32>
    tpu.vector_store %arg5[%c0_11, %c0_12], %15 {strides = array<i32>} : memref<16x128xf32, #tpu.memory_space<vmem>>, vector<16x128xf32>,
    %c0_i32_13 = arith.constant 0 : i32
    %17 = arith.cmpi eq, %arg0, %c0_i32_13 : i32
    %18 = arith.extui %17 : i1 to i32
    %c0_i32_14 = arith.constant 0 : i32
    %19 = arith.cmpi ne, %18, %c0_i32_14 : i32
    scf.if %19 {
      %c0_15 = arith.constant 0 : index
      %c0_16 = arith.constant 0 : index
      %20 = vector.load %arg4[%c0_15, %c0_16] : memref<16x128xf32, #tpu.memory_space<vmem>>, vector<16x128xf32>
      %21 = vector.shape_cast %20 : vector<16x128xf32> to vector<1x16x128xf32>
      %cst_17 = arith.constant dense<0.000000e+00> : vector<1xf32>
      %22 = vector.multi_reduction <add>, %21, %cst_17 [1, 2] : vector<1x16x128xf32> to vector<1xf32>
      %23 = vector.shape_cast %22 : vector<1xf32> to vector<1x1x1xf32>
      %24 = vector.extract %23[0, 0, 0] : f32 from vector<1x1x1xf32>
      %c0_18 = arith.constant 0 : index
      %25 = memref.load %arg3[%c0_18] : memref<2xf32, #tpu.memory_space<smem>>
      memref.store %24, %arg3[%c0_18] : memref<2xf32, #tpu.memory_space<smem>>
      %c0_19 = arith.constant 0 : index
      %c0_20 = arith.constant 0 : index
      %26 = vector.load %arg5[%c0_19, %c0_20] : memref<16x128xf32, #tpu.memory_space<vmem>>, vector<16x128xf32>
      %27 = vector.shape_cast %26 : vector<16x128xf32> to vector<1x16x128xf32>
      %cst_21 = arith.constant dense<0.000000e+00> : vector<1xf32>
      %28 = vector.multi_reduction <add>, %27, %cst_21 [1, 2] : vector<1x16x128xf32> to vector<1xf32>
      %29 = vector.shape_cast %28 : vector<1xf32> to vector<1x1x1xf32>
      %30 = vector.extract %29[0, 0, 0] : f32 from vector<1x1x1xf32>
      %c1 = arith.constant 1 : index
      %31 = memref.load %arg3[%c1] : memref<2xf32, #tpu.memory_space<smem>>
      memref.store %30, %arg3[%c1] : memref<2xf32, #tpu.memory_space<smem>>
    } else {
    }
    return
  }
  func.func @transform_0(%arg0: i32) -> (i32, i32) {
    %c0_i32 = arith.constant 0 : i32
    %c0_i32_0 = arith.constant 0 : i32
    return %arg0, %c0_i32 : i32, i32
  }
  func.func @transform_1(%arg0: i32) -> (i32, i32) {
    %c0_i32 = arith.constant 0 : i32
    %c0_i32_0 = arith.constant 0 : i32
    return %arg0, %c0_i32 : i32, i32
  }
  func.func @transform_2(%arg0: i32) -> i32 {
    %c0_i32 = arith.constant 0 : i32
    %c0_i32_0 = arith.constant 0 : i32
    return %c0_i32 : i32
  }
}

</mosaic_0001>

<bundles_post_ra>
// kernel: tpu_custom_call.1
= control target key start
LH: loop header
LB: loop body
LE: loop exit
PB: predicated region body
PF: predicated region fallthrough
CT: control target
= control target key end

     0   :  { %7 = vsyncpa [#allocation5], 0  ;;  %s243_s0 = inlined_call_operand.hbm [shape: f32[16,128], index: 0, kind: input, shape index: {}]   ;;  %s244_s1 = inlined_call_operand.hbm [shape: f32[16,128], index: 1, kind: input, shape index: {}]   ;;  %s245_s2 = inlined_call_operand.hbm [shape: f32[2], index: 2, kind: output, shape index: {}]  }
   0x1   :  { %8 = vsyncpa [#allocation8], 0 }
   0x2   :  { %9 = vsyncpa [#allocation6], 0  ;;  %s187_s9 = smov [#allocation4]   ;;  %s127_s13 = scalar_lea.hbm %s243_s0, 256 }
   0x3   :  { %s15_s10 = sshll.u32 %s187_s9, 4  ;;  %p128_p0 = scmp.ne.s32.totalorder %s243_s0, %s127_s13  ;;  %s16_s10 = int_to_ptr.vmem [resolvable:$true] %s15_s10 }
   0x4   :  { %p131_p1 = scmp.lt.u32.totalorder %s127_s13, %s243_s0 }
   0x6   :  { %p133_p2 = pnand %p131_p1, %p128_p0 }
   0x8   :  { %136 = shalt.err (!%p133_p2)
}
   0x9   :  { %s137_s18 = scalar_lea.vmem %s16_s10, 256  ;;  %p142_p4 = scmp.lt.s32.totalorder %s16_s10, %s16_s10 }
   0xa   :  { %p138_p3 = scmp.ne.s32.totalorder %s16_s10, %s137_s18  ;;  %p143_p5 = scmp.lt.s32.totalorder %s137_s18, %s137_s18 }
   0xc   :  { %p144_p6 = por %p143_p5, %p142_p4 }
   0xe   :  { %p145_p7 = pnand %p144_p6, %p138_p3 }
  0x10   :  { %148 = shalt.err (!%p145_p7)
}
  0x11   :  { %s188_s19 = smov 128   ;;  %s189_s20 = smov 8  }
  0x12   :  { %21 = dma.hbm_to_vmem [thread:$0]  %s243_s0, 256, %s16_s10, [#allocation5], %s188_s19, %s188_s19, %s189_s20  }
  0x13   :  { %s190_s23 = smov [#allocation7]   ;;  %s149_s27 = scalar_lea.hbm %s244_s1, 256 }
  0x14   :  { %s27_s24 = sshll.u32 %s190_s23, 4  ;;  %p150_p8 = scmp.ne.s32.totalorder %s244_s1, %s149_s27  ;;  %s28_s24 = int_to_ptr.vmem [resolvable:$true] %s27_s24 }
  0x15   :  { %p153_p9 = scmp.lt.u32.totalorder %s149_s27, %s244_s1 }
  0x17   :  { %p155_p10 = pnand %p153_p9, %p150_p8 }
  0x19   :  { %158 = shalt.err (!%p155_p10)
}
  0x1a   :  { %s159_s4 = scalar_lea.vmem %s28_s24, 256  ;;  %p164_p12 = scmp.lt.s32.totalorder %s28_s24, %s28_s24 }
  0x1b   :  { %p160_p11 = scmp.ne.s32.totalorder %s28_s24, %s159_s4  ;;  %p165_p13 = scmp.lt.s32.totalorder %s159_s4, %s159_s4 }
  0x1d   :  { %p166_p0 = por %p165_p13, %p164_p12 }
  0x1f   :  { %p167_p1 = pnand %p166_p0, %p160_p11 }
  0x21   :  { %170 = shalt.err (!%p167_p1)
}
  0x22   :  { %33 = dma.hbm_to_vmem [thread:$0]  %s244_s1, 256, %s28_s24, [#allocation8], %s188_s19, %s188_s19, %s189_s20  }
  0x23   :  { %181 = dma.done.wait [#allocation5], 256  }
  0x24   :  { %182 = vsyncadd [#allocation5], 4294967040 }
  0x25   :  { %183 = dma.done.wait [#allocation8], 256  }
  0x26   :  { %184 = vsyncadd [#allocation8], 4294967040  ;;  %v48_v0 = vld [vmem:[#allocation4] sm:$0xff]  ;;  %v49_v1 = vld [vmem:[#allocation4 + $0x8] sm:$0xff]  ;;  %s171_s9 = scalar_lea.hbm %s245_s2, 16 }
  0x27   :  { %v60_v2 = vld [vmem:[#allocation7] sm:$0xff]  ;;  %v50_v3 = vadd.f32 -1.0, %v48_v0  ;;  %v51_v4 = vadd.f32 -1.0, %v49_v1  ;;  %v61_v5 = vld [vmem:[#allocation7 + $0x8] sm:$0xff]  ;;  %p172_p2 = scmp.ne.s32.totalorder %s245_s2, %s171_s9  ;;  %p175_p3 = scmp.lt.u32.totalorder %s171_s9, %s245_s2 }
  0x28   :  { %v62_v6 = vadd.f32 1.0, %v60_v2  ;;  %v63_v7 = vadd.f32 1.0, %v61_v5 }
  0x29   :  { %v52_v8 = vmul.f32 %v50_v3, %v50_v3  ;;  %v53_v9 = vmul.f32 %v51_v4, %v51_v4  ;;  %p177_p4 = pnand %p175_p3, %p172_p2 }
  0x2a   :  { %v64_v10 = vmul.f32 %v62_v6, %v62_v6  ;;  %v65_v11 = vmul.f32 %v63_v7, %v63_v7 }
  0x2b   :  { %v77_v12 = vadd.f32 %v53_v9, %v52_v8 }
  0x2c   :  { %v91_v13 = vadd.f32 %v65_v11, %v64_v10 }
  0x2d   :  { %78 = vadd.xlane.f32.xlu0 %v77_v12 }
  0x31   :  { %92 = vadd.xlane.f32.xlu0 %v91_v13 }
  0xba   :  { %v79_v14 = vpop.xlane.xlu0 %78 }
  0xbb   :  { %v80_v15 = vrot.slane %v79_v14, 4 }
  0xbd   :  { %v81_v16 = vadd.f32 %v80_v15, %v79_v14 }
  0xbe   :  { %v93_v17 = vpop.xlane.xlu0 %92 }
  0xbf   :  { %v82_v18 = vrot.slane %v81_v16, 2  ;;  %v94_v19 = vrot.slane %v93_v17, 4 }
  0xc1   :  { %v95_v20 = vadd.f32 %v94_v19, %v93_v17  ;;  %v83_v21 = vadd.f32 %v82_v18, %v81_v16 }
  0xc3   :  { %v96_v22 = vrot.slane %v95_v20, 2  ;;  %v84_v23 = vrot.slane %v83_v21, 1 }
  0xc5   :  { %v97_v24 = vadd.f32 %v96_v22, %v95_v20  ;;  %v85_v25 = vadd.f32 %v84_v23, %v83_v21 }
  0xc7   :  { %118 = vpush %v85_v25  ;;  %v98_v26 = vrot.slane %v97_v24, 1 }
  0xc9   :  { %v99_v27 = vadd.f32 %v98_v26, %v97_v24 }
  0xcb   :  { %120 = vpush %v99_v27 }
  0xf8   :  { %s119_s1 = spop %118 }
  0xf9   :  { %88 = sst [smem:[#allocation9]] %s119_s1 }
  0xfc   :  { %s121_s6 = spop %120 }
  0xfd   :  { %102 = sst [smem:[#allocation9 + $0x1]] %s121_s6 }
  0xfe   :  { %180 = shalt.err (!%p177_p4)
}
  0xff   :  { %s191_s14 = smov [#allocation9]  }
 0x100   :  { %110 = dma.smem_to_hbm %s191_s14, 16, %s245_s2, [#allocation6]  }
 0x101   :  { %185 = dma.done.wait [#allocation6], 16  }
 0x102   :  { %186 = vsyncadd [#allocation6], 4294967280 }
 0x103   :  { %114 = sfence }
 0x104   :  { %115 = vsyncpa [#allocation5], 1 }
 0x105   :  { %116 = vsyncpa [#allocation8], 1 }
 0x106   :  { %117 = vsyncpa [#allocation6], 1 }

</bundles_post_ra>
